<compile_context>
chip_gen: v5e
topology: v5e:2x2
jax: 0.10.0
libtpu: 0.0.40
codegen_flags: <defaults>
</compile_context>

<pallas_src>
import math

import jax
import jax.numpy as jnp
from jax.experimental import pallas as pl
from jax.experimental.pallas import tpu as pltpu


def ffn_kernel(x_ref, w1_ref, b1_ref, w2_ref, b2_ref, o_ref):
    # Hot path: two MXU matmuls (f32 accumulation) + VPU bias-add / ReLU.
    x = x_ref[...]
    h = jnp.dot(x, w1_ref[...], preferred_element_type=jnp.float32)
    h = jnp.maximum(h + b1_ref[...], 0.0)  # nn.ReLU(True): inplace flag is a no-op
    # Narrow the second matmul's LHS back to the weight dtype (bf16 params ->
    # full-rate MXU on v6e/v7x); accumulation stays float32.
    h = h.astype(w2_ref.dtype)
    y = jnp.dot(h, w2_ref[...], preferred_element_type=jnp.float32) + b2_ref[...]
    o_ref[...] = y.astype(o_ref.dtype)


def feed_forward_network(x, w1, b1, w2, b2, *, tm=256):
    """x: (..., features); w1: (features, ff); b1: (1, ff);
    w2: (ff, features); b2: (1, features)."""
    features = x.shape[-1]
    ff = w1.shape[1]
    lead_shape = x.shape[:-1]
    m = int(math.prod(lead_shape)) if lead_shape else 1
    x2d = x.reshape(m, features)

    # Token-tile size: multiple of 8 (sublane), clamped to the (padded) problem.
    m_ceil8 = -(-m // 8) * 8
    tm = max(8, min(tm, m_ceil8))
    tm = -(-tm // 8) * 8
    n_tiles = pl.cdiv(m, tm)
    m_pad = n_tiles * tm
    if m_pad != m:
        # Zero-pad the token dim; padded rows are computed then discarded.
        x2d = jnp.pad(x2d, ((0, m_pad - m), (0, 0)))

    out = pl.pallas_call(
        ffn_kernel,
        out_shape=jax.ShapeDtypeStruct((m_pad, features), x.dtype),
        grid_spec=pltpu.PrefetchScalarGridSpec(
            num_scalar_prefetch=0,
            grid=(n_tiles,),
            in_specs=[
                # Activations: streamed / double-buffered per M tile.
                pl.BlockSpec((tm, features), lambda i: (i, 0)),
                # Weights & biases: constant index_map -> VMEM-resident.
                pl.BlockSpec((features, ff), lambda i: (0, 0)),
                pl.BlockSpec((1, ff), lambda i: (0, 0)),
                pl.BlockSpec((ff, features), lambda i: (0, 0)),
                pl.BlockSpec((1, features), lambda i: (0, 0)),
            ],
            out_specs=pl.BlockSpec((tm, features), lambda i: (i, 0)),
        ),
        compiler_params=pltpu.CompilerParams(
            # M tiles are fully independent -> megacore-shardable on v7x.
            dimension_semantics=("parallel",),
            # Raise the 32 MiB scoped-VMEM default (<= 64 MiB physical on v7x).
            vmem_limit_bytes=64 * 1024 * 1024,
        ),
    )(x2d, w1, b1, w2, b2)

    if m_pad != m:
        out = out[:m]
    return out.reshape(*lead_shape, features)


def init_params(key, features, fffeatures, dtype=jnp.float32):
    """Deterministic init matching nn.Linear's default U(-1/sqrt(in), 1/sqrt(in))."""
    k1, k2, k3, k4 = jax.random.split(key, 4)
    bound1 = 1.0 / math.sqrt(features)
    bound2 = 1.0 / math.sqrt(fffeatures)
    # Stored already transposed: (in, out)
    w1 = jax.random.uniform(k1, (features, fffeatures), dtype, -bound1, bound1)
    b1 = jax.random.uniform(k2, (1, fffeatures), dtype, -bound1, bound1)
    w2 = jax.random.uniform(k3, (fffeatures, features), dtype, -bound2, bound2)
    b2 = jax.random.uniform(k4, (1, features), dtype, -bound2, bound2)
    return w1, b1, w2, b2


if __name__ == "__main__":
    # Small but lane-dense demo shapes (features/ff multiples of 128 keep the
    # MXU and the store path fully utilized); m = 512 tokens -> 2 grid tiles.
    batch, seq, features, fffeatures = 2, 256, 128, 256

    key = jax.random.PRNGKey(0)
    kx, kp = jax.random.split(key)
    x = jax.random.normal(kx, (batch, seq, features), jnp.float32)
    w1, b1, w2, b2 = init_params(kp, features, fffeatures)

    out = feed_forward_network(x, w1, b1, w2, b2)
    out = jax.block_until_ready(out)

    # Pure-JAX reference (same math as the PyTorch module's forward).
    ref = jnp.maximum(x @ w1 + b1[0], 0.0) @ w2 + b2[0]
    assert out.shape == (batch, seq, features)
    assert jnp.allclose(out, ref, atol=1e-4, rtol=1e-4)

    print("KERNEL_OK")
</pallas_src>

<mosaic_0001>
module attributes {stable_mosaic.version = 11 : i64} {
  func.func @ffn_kernel(%arg0: i32, %arg1: memref<256x128xf32, #tpu.memory_space<vmem>>, %arg2: memref<128x256xf32, #tpu.memory_space<vmem>>, %arg3: memref<1x256xf32, #tpu.memory_space<vmem>>, %arg4: memref<256x128xf32, #tpu.memory_space<vmem>>, %arg5: memref<1x128xf32, #tpu.memory_space<vmem>>, %arg6: memref<256x128xf32, #tpu.memory_space<vmem>>) attributes {dimension_semantics = [#tpu.dimension_semantics<parallel>], iteration_bounds = array<i64: 2>, scalar_prefetch = 0 : i64, scratch_operands = 0 : i64, tpu.core_type = #tpu.core_type<tc>, window_params = [{transform_indices = @transform_0, window_bounds = array<i64: 256, 128>}, {pipeline_mode = #tpu.pipeline_mode<synchronous>, transform_indices = @transform_1, window_bounds = array<i64: 128, 256>}, {pipeline_mode = #tpu.pipeline_mode<synchronous>, transform_indices = @transform_2, window_bounds = array<i64: 1, 256>}, {pipeline_mode = #tpu.pipeline_mode<synchronous>, transform_indices = @transform_3, window_bounds = array<i64: 256, 128>}, {pipeline_mode = #tpu.pipeline_mode<synchronous>, transform_indices = @transform_4, window_bounds = array<i64: 1, 128>}, {transform_indices = @transform_5, window_bounds = array<i64: 256, 128>}]} {
    %c0 = arith.constant 0 : index
    %c0_0 = arith.constant 0 : index
    %0 = vector.load %arg1[%c0, %c0_0] : memref<256x128xf32, #tpu.memory_space<vmem>>, vector<256x128xf32>
    %c0_1 = arith.constant 0 : index
    %c0_2 = arith.constant 0 : index
    %1 = vector.load %arg2[%c0_1, %c0_2] : memref<128x256xf32, #tpu.memory_space<vmem>>, vector<128x256xf32>
    %cst = arith.constant dense<0.000000e+00> : vector<256x256xf32>
    %2 = tpu.matmul %0, %1, %cst {dimension_numbers = #tpu.dot_dimension_numbers<[1], [0], [0], [1], [0, 0, 1, 1], [], []>} : vector<256x128xf32>, vector<128x256xf32>, vector<256x256xf32> -> vector<256x256xf32>
    %c0_3 = arith.constant 0 : index
    %c0_4 = arith.constant 0 : index
    %3 = vector.load %arg3[%c0_3, %c0_4] : memref<1x256xf32, #tpu.memory_space<vmem>>, vector<1x256xf32>
    %4 = vector.broadcast %3 : vector<1x256xf32> to vector<256x256xf32>
    %5 = arith.addf %2, %4 : vector<256x256xf32>
    %cst_5 = arith.constant 0.000000e+00 : f32
    %6 = vector.broadcast %cst_5 : f32 to vector<256x256xf32>
    %7 = arith.maximumf %5, %6 : vector<256x256xf32>
    %c0_6 = arith.constant 0 : index
    %c0_7 = arith.constant 0 : index
    %8 = vector.load %arg4[%c0_6, %c0_7] : memref<256x128xf32, #tpu.memory_space<vmem>>, vector<256x128xf32>
    %cst_8 = arith.constant dense<0.000000e+00> : vector<256x128xf32>
    %9 = tpu.matmul %7, %8, %cst_8 {dimension_numbers = #tpu.dot_dimension_numbers<[1], [0], [0], [1], [0, 0, 1, 1], [], []>} : vector<256x256xf32>, vector<256x128xf32>, vector<256x128xf32> -> vector<256x128xf32>
    %c0_9 = arith.constant 0 : index
    %c0_10 = arith.constant 0 : index
    %10 = vector.load %arg5[%c0_9, %c0_10] : memref<1x128xf32, #tpu.memory_space<vmem>>, vector<1x128xf32>
    %11 = vector.broadcast %10 : vector<1x128xf32> to vector<256x128xf32>
    %12 = arith.addf %9, %11 : vector<256x128xf32>
    %c0_11 = arith.constant 0 : index
    %c0_12 = arith.constant 0 : index
    %13 = vector.load %arg6[%c0_11, %c0_12] : memref<256x128xf32, #tpu.memory_space<vmem>>, vector<256x128xf32>
    tpu.vector_store %arg6[%c0_11, %c0_12], %12 {strides = array<i32>} : memref<256x128xf32, #tpu.memory_space<vmem>>, vector<256x128xf32>,
    return
  }
  func.func @transform_0(%arg0: i32) -> (i32, i32) {
    %c0_i32 = arith.constant 0 : i32
    %c0_i32_0 = arith.constant 0 : i32
    return %arg0, %c0_i32 : i32, i32
  }
  func.func @transform_1(%arg0: i32) -> (i32, i32) {
    %c0_i32 = arith.constant 0 : i32
    %c0_i32_0 = arith.constant 0 : i32
    %c0_i32_1 = arith.constant 0 : i32
    return %c0_i32, %c0_i32_0 : i32, i32
  }
  func.func @transform_2(%arg0: i32) -> (i32, i32) {
    %c0_i32 = arith.constant 0 : i32
    %c0_i32_0 = arith.constant 0 : i32
    %c0_i32_1 = arith.constant 0 : i32
    return %c0_i32, %c0_i32_0 : i32, i32
  }
  func.func @transform_3(%arg0: i32) -> (i32, i32) {
    %c0_i32 = arith.constant 0 : i32
    %c0_i32_0 = arith.constant 0 : i32
    %c0_i32_1 = arith.constant 0 : i32
    return %c0_i32, %c0_i32_0 : i32, i32
  }
  func.func @transform_4(%arg0: i32) -> (i32, i32) {
    %c0_i32 = arith.constant 0 : i32
    %c0_i32_0 = arith.constant 0 : i32
    %c0_i32_1 = arith.constant 0 : i32
    return %c0_i32, %c0_i32_0 : i32, i32
  }
  func.func @transform_5(%arg0: i32) -> (i32, i32) {
    %c0_i32 = arith.constant 0 : i32
    %c0_i32_0 = arith.constant 0 : i32
    return %arg0, %c0_i32 : i32, i32
  }
}

</mosaic_0001>

<bundles_post_ra>
// kernel: tpu_custom_call.1
= control target key start
LH: loop header
LB: loop body
LE: loop exit
PB: predicated region body
PF: predicated region fallthrough
CT: control target
= control target key end

     0   :  { %10 = vsyncpa [#allocation3], 0  ;;  %s1750_s0 = inlined_call_operand.hbm [shape: f32[512,128], index: 0, kind: input, shape index: {}]   ;;  %s1751_s1 = inlined_call_operand.hbm [shape: f32[128,256], index: 1, kind: input, shape index: {}]   ;;  %s1752_s2 = inlined_call_operand.hbm [shape: f32[1,256], index: 2, kind: input, shape index: {}]   ;;  %s1753_s3 = inlined_call_operand.hbm [shape: f32[256,128], index: 3, kind: input, shape index: {}]   ;;  %s1754_s4 = inlined_call_operand.vmem [shape: f32[1,128], index: 4, kind: input, shape index: {}]   ;;  %s1755_s5 = inlined_call_operand.hbm [shape: f32[512,128], index: 5, kind: output, shape index: {}]  }
   0x1   :  { %12 = vsyncpa [#allocation3 + $0x1], 0 }
   0x2   :  { %13 = vsyncpa [#allocation6], 0 }
   0x3   :  { %14 = vsyncpa [#allocation9], 0 }
   0x4   :  { %15 = vsyncpa [#allocation4], 0 }
   0x5   :  { %17 = vsyncpa [#allocation4 + $0x1], 0  ;;  %s1408_s18 = smov 0   ;;  %s1410_s19 = smov 0  }
   0x6   :  { %s1412_s20 = smov 0   ;;  %s1414_s21 = smov 0  }
   0x7 LB: > { %s1429_s22 = sadd.s32 4294967295, %s1367_s21   ;;  %s1067_s23 = sadd.s32 4294967294, %s1367_s21   ;;  %s1367_s21 = sphi %s1414_s21, %s1768_s21   ;;  %s1363_s20 = sphi %s1412_s20, %s1767_s20   ;;  %s1359_s19 = sphi %s1410_s19, %s1766_s19   ;;  %s1355_s18 = sphi %s1408_s18, %s1765_s18  }
   0x8   : > { %p43_p0 = scmp.ne.s32.totalorder %s1359_s19, %s1355_s18  ;;  %p44_p1 = scmp.eq.s32.totalorder %s1429_s22, 0 }
   0x9   : > { %p151_p2 = scmp.eq.s32.totalorder %s1429_s22, 1  ;;  %p157_p3 = scmp.eq.s32.totalorder %s1067_s23, 1 }
   0xa   : > { %p1438_p4 = por %p44_p1, %p43_p0  ;;  %p1068_p5 = scmp.ge.s32.totalorder %s1367_s21, 1 }
   0xb   : > { %p1443_p6 = por %p157_p3, %p43_p0  ;;  %p164_p7 = scmp.lt.s32.totalorder %s1367_s21, 3 }
   0xc   : > { %s175_s28 = sshll.u32 %s1751_s1, 4  ;;  %s1369_s30 = smov [#allocation5]   ;;  %s176_s28 = int_to_ptr.hbm [resolvable:$true] %s175_s28 }
   0xd   : > { %p1451_p8 = pnand %p1068_p5, %p164_p7  ;;  %s177_s6 = sshll.u32 %s1369_s30, 4  ;;  %s178_s6 = int_to_ptr.vmem [resolvable:$true] %s177_s6 }
   0xe   : > { %s190_s10 = sshll.u32 %s1752_s2, 4  ;;  %s1370_s11 = smov 256   ;;  %s191_s10 = int_to_ptr.hbm [resolvable:$true] %s190_s10 }
   0xf   : > { %p1105_p9 = pneg %p1451_p8  ;;  %s1371_s12 = smov 16  }
  0x10   : > { %s1372_s13 = smov [#allocation7]   ;;  %s201_s17 = sshll.u32 %s1753_s3, 4  ;;  %s202_s17 = int_to_ptr.hbm [resolvable:$true] %s201_s17 }
  0x11   : > { %p1459_p10 = pnand %p1105_p9, %p44_p1  ;;  %s192_s14 = sshll.u32 %s1372_s13, 4  ;;  %s193_s14 = int_to_ptr.vmem [resolvable:$true] %s192_s14 }
  0x12   : > { %s1373_s23 = smov [#allocation8]   ;;  %s1756_s27 = smov 128  }
  0x13   : > { %1108 = dma.hbm_to_vmem [thread:$0]  (!%p1459_p10), %s176_s28, 4096, %s178_s6, [#allocation6], %s1370_s11, %s1370_s11, %s1371_s12  }
  0x14   : > { %1111 = dma.hbm_to_vmem [thread:$0]  (!%p1459_p10), %s191_s10, 32, %s193_s14, [#allocation6]  }
  0x15   : > { %s203_s26 = sshll.u32 %s1373_s23, 4  ;;  %s1375_s28 = smov 8   ;;  %s204_s26 = int_to_ptr.vmem [resolvable:$true] %s203_s26 }
  0x16   : > { %1114 = dma.hbm_to_vmem [thread:$0]  (!%p1459_p10), %s202_s17, 4096, %s204_s26, [#allocation9], %s1756_s27, %s1756_s27, %s1375_s28  }
  0x17   : > { %s1480_s30 = sadd.s32 1, %s1367_s21   ;;  %s30_s8 = sadd.s32 1, %s1363_s20 }
  0x18   : > { %s27_s6 = ssub.s32 %s1367_s21, %s1480_s30  ;;  %p37_p13 = scmp.ne.s32.totalorder %s1363_s20, %s1359_s19 }
  0x19   : > { %p28_p12 = scmp.eq.s32.totalorder %s27_s6, 0  ;;  %p38_p0 = scmp.eq.s32.totalorder %s1367_s21, 0 }
  0x1a   : > { %p1493_p3 = por %p151_p2, %p37_p13  ;;  %p1126_p5 = scmp.lt.s32.totalorder %s1367_s21, 2 }
  0x1b   : > { %s1489_s9 = scalar_select %p28_p12, %s1363_s20, %s30_s8  }
  0x1c   : > { %s220_s7 = sand.u32 1, %s1363_s20   ;;  %s1087_s11 = sshll.u32 %s1367_s21, 8 }
  0x1d   : > { %p39_p7 = por %p38_p0, %p37_p13  ;;  %s1073_s12 = sshll.u32 %s220_s7, 8 }
  0x1e   : > { %s229_s15 = scalar_lea.hbm %s1750_s0, %s1087_s11  ;;  %s224_s17 = scalar_lea.vmem [#allocation2], %s1073_s12 }
  0x1f   : > { %s230_s16 = sshll.u32 %s229_s15, 4  ;;  %s232_s23 = sshll.u32 %s224_s17, 4  ;;  %s231_s16 = int_to_ptr.hbm [resolvable:$true] %s230_s16  ;;  %s233_s23 = int_to_ptr.vmem [resolvable:$true] %s232_s23 }
  0x20   : > { %p1503_p9 = pnand %p1126_p5, %p39_p7  ;;  %s221_s6 = scalar_lea.sflag [#allocation3], %s220_s7 }
  0x21   : > { %s1263_s8 = sshra.s32 %s231_s16, 4  ;;  %s1270_s12 = scalar_lea.hbm %s1750_s0, 512  ;;  %s1264_s8 = int_to_ptr.hbm [resolvable:$true] %s1263_s8 }
  0x22   : > { %s1265_s27 = scalar_lea.hbm %s1264_s8, 256  ;;  %p1267_p10 = pneg %p1503_p9 }
  0x23   : > { %p1266_p2 = scmp.ne.s32.totalorder %s1264_s8, %s1265_s27  ;;  %p1271_p0 = scmp.lt.s32.totalorder %s1264_s8, %s1750_s0 }
  0x24   : > { %p1272_p5 = scmp.lt.s32.totalorder %s1270_s12, %s1265_s27 }
  0x25   : > { %p1268_p12 = pnand %p1267_p10, %p1266_p2 }
  0x26   : > { %p1273_p7 = por %p1272_p5, %p1271_p0 }
  0x27   : > { %p1269_p13 = pneg %p1268_p12 }
  0x29   : > { %p1274_p11 = pnand %p1273_p7, %p1269_p13 }
  0x2b   : > { %1277 = shalt.err (!%p1274_p11)
}
  0x2c   : > { %s1763_s7 = smov 128   ;;  %244 = sbr.rel (%p1451_p8) target bundleno = 604 (0x25c), region = 40 }
  0x2d   : > { %1118 = dma.hbm_to_vmem [thread:$0]  (!%p1503_p9), %s231_s16, 4096, %s233_s23, %s221_s6, %s1763_s7, %s1763_s7, %s1375_s28  }
  0x2e   : > { %s1523_s17 = sand.u32 (!%p1451_p8), 1, %s1359_s19  }
  0x2f   : > { %s1077_s27 = sshll.u32 (!%p1451_p8), %s1523_s17, 8  ;;  %s247_s8 = scalar_lea.sflag (!%p1451_p8), [#allocation3], %s1523_s17 }
  0x30   : > { %s1529_s11 = scalar_lea.vmem (!%p1451_p8), [#allocation2], %s1077_s27 }
  0x31   : > { %1338 = dma.done.wait (%p1438_p4), %s247_s8, 4096  }
  0x32   : > { %1340 = vsyncadd (%p1438_p4), %s247_s8, 4294963200 }
  0x33   : > { %1342 = dma.done.wait (%p44_p1), [#allocation6], 4128  }
  0x34   : > { %1344 = vsyncadd (%p44_p1), [#allocation6], 4294963168 }
  0x35   : > { %1346 = dma.done.wait (%p44_p1), [#allocation9], 4096  }
  0x36   : > { %1348 = vsyncadd (%p44_p1), [#allocation9], 4294963200  ;;  %v357_v0 = vld [vmem:[#allocation5 + $0xf0] sm:$0xff]  ;;  %v355_v1 = vld [vmem:[#allocation5 + $0xe0] sm:$0xff]  ;;  %s1623_s28 = scalar_lea.vmem [#allocation10], %s1077_s27  ;;  %s1088_s16 = sshll.u32 %s1429_s22, 8 }
  0x37   : > { %v358_v2 = vld [vmem:[#allocation5 + $0xf8] sm:$0xff]  ;;  %365 = vmatpush.msra.mxu0 %v357_v0  ;;  %v356_v3 = vld [vmem:[#allocation5 + $0xe8] sm:$0xff]  ;;  %v353_v4 = vld [vmem:[#allocation5 + $0xd0] sm:$0xff]  ;;  %s961_s6 = scalar_lea.hbm %s1755_s5, %s1088_s16  ;;  %s962_s13 = sshll.u32 %s1623_s28, 4  ;;  %s963_s13 = int_to_ptr.vmem [resolvable:$true] %s962_s13 }
  0x38   : > { %478 = vmatpush.msra.mxu1 %v358_v2  ;;  %v354_v5 = vld [vmem:[#allocation5 + $0xd8] sm:$0xff]  ;;  %v351_v6 = vld [vmem:[#allocation5 + $0xc0] sm:$0xff]  ;;  %v352_v7 = vld [vmem:[#allocation5 + $0xc8] sm:$0xff]  ;;  %s964_s12 = sshll.u32 %s961_s6, 4  ;;  %s950_s14 = scalar_lea.sflag [#allocation4], %s1523_s17  ;;  %s965_s12 = int_to_ptr.hbm [resolvable:$true] %s964_s12 }
  0x39   : > { %366 = vmatpush.msra.mxu0 %v355_v1  ;;  %v349_v8 = vld [vmem:[#allocation5 + $0xb0] sm:$0xff]  ;;  %v350_v9 = vld [vmem:[#allocation5 + $0xb8] sm:$0xff]  ;;  %v347_v10 = vld [vmem:[#allocation5 + $0xa0] sm:$0xff]  ;;  %s1307_s15 = sshra.s32 %s965_s12, 4  ;;  %s1313_s8 = scalar_lea.hbm %s1755_s5, 512  ;;  %s1308_s15 = int_to_ptr.hbm [resolvable:$true] %s1307_s15 }
  0x3a   : > { %479 = vmatpush.msra.mxu1 %v356_v3  ;;  %v348_v11 = vld [vmem:[#allocation5 + $0xa8] sm:$0xff]  ;;  %v345_v12 = vld [vmem:[#allocation5 + $0x90] sm:$0xff]  ;;  %v346_v13 = vld [vmem:[#allocation5 + $0x98] sm:$0xff]  ;;  %s1309_s22 = scalar_lea.hbm %s1308_s15, 256  ;;  %p1314_p11 = scmp.lt.s32.totalorder %s1308_s15, %s1755_s5 }
  0x3b   : > { %367 = vmatpush.msra.mxu0 %v353_v4  ;;  %v343_v14 = vld [vmem:[#allocation5 + $0x80] sm:$0xff]  ;;  %v344_v15 = vld [vmem:[#allocation5 + $0x88] sm:$0xff]  ;;  %v341_v16 = vld [vmem:[#allocation5 + $0x70] sm:$0xff]  ;;  %p1310_p1 = scmp.ne.s32.totalorder %s1308_s15, %s1309_s22  ;;  %p1315_p9 = scmp.lt.s32.totalorder %s1313_s8, %s1309_s22 }
  0x3c   : > { %480 = vmatpush.msra.mxu1 %v354_v5  ;;  %v342_v17 = vld [vmem:[#allocation5 + $0x78] sm:$0xff]  ;;  %v339_v18 = vld [vmem:[#allocation5 + $0x60] sm:$0xff]  ;;  %v340_v19 = vld [vmem:[#allocation5 + $0x68] sm:$0xff] }
  0x3d   : > { %368 = vmatpush.msra.mxu0 %v351_v6  ;;  %v337_v20 = vld [vmem:[#allocation5 + $0x50] sm:$0xff]  ;;  %v338_v21 = vld [vmem:[#allocation5 + $0x58] sm:$0xff]  ;;  %v335_v22 = vld [vmem:[#allocation5 + $0x40] sm:$0xff]  ;;  %p1311_p4 = pnand %p1310_p1, %p1493_p3  ;;  %p1316_p2 = por %p1315_p9, %p1314_p11 }
  0x3e   : > { %481 = vmatpush.msra.mxu1 %v352_v7  ;;  %v336_v23 = vld [vmem:[#allocation5 + $0x48] sm:$0xff]  ;;  %v333_v24 = vld [vmem:[#allocation5 + $0x30] sm:$0xff]  ;;  %v334_v25 = vld [vmem:[#allocation5 + $0x38] sm:$0xff] }
  0x3f   : > { %369 = vmatpush.msra.mxu0 %v349_v8  ;;  %v331_v26 = vld [vmem:[#allocation5 + $0x20] sm:$0xff]  ;;  %v332_v27 = vld [vmem:[#allocation5 + $0x28] sm:$0xff]  ;;  %v329_v28 = vld [vmem:[#allocation5 + $0x10] sm:$0xff]  ;;  %p1312_p8 = pneg %p1311_p4 }
  0x40   : > { %482 = vmatpush.msra.mxu1 %v350_v9  ;;  %v330_v29 = vld [vmem:[#allocation5 + $0x18] sm:$0xff]  ;;  %v327_v30 = vld [vmem:[#allocation5] sm:$0xff]  ;;  %v328_v31 = vld [vmem:[#allocation5 + $0x8] sm:$0xff] }
  0x41   : > { %370 = vmatpush.msra.mxu0 %v347_v10  ;;  %v295_v32 = vld [vmem:[%s1529_s11] sm:$0xff]  ;;  %v296_v33 = vld [vmem:[%s1529_s11 + $0x8] sm:$0xff]  ;;  %v297_v34 = vld [vmem:[%s1529_s11 + $0x10] sm:$0xff]  ;;  %p1317_p10 = pnand %p1316_p2, %p1312_p8 }
  0x42   : > { %483 = vmatpush.msra.mxu1 %v348_v11  ;;  %v298_v35 = vld [vmem:[%s1529_s11 + $0x18] sm:$0xff]  ;;  %v299_v36 = vld [vmem:[%s1529_s11 + $0x20] sm:$0xff]  ;;  %v300_v37 = vld [vmem:[%s1529_s11 + $0x28] sm:$0xff] }
  0x43   : > { %371 = vmatpush.msra.mxu0 %v345_v12  ;;  %v301_v38 = vld [vmem:[%s1529_s11 + $0x30] sm:$0xff]  ;;  %v302_v39 = vld [vmem:[%s1529_s11 + $0x38] sm:$0xff]  ;;  %v303_v40 = vld [vmem:[%s1529_s11 + $0x40] sm:$0xff] }
  0x44   : > { %484 = vmatpush.msra.mxu1 %v346_v13  ;;  %v670_v41 = vld [vmem:[#allocation8 + $0x78] sm:$0xff]  ;;  %v669_v42 = vld [vmem:[#allocation8 + $0x70] sm:$0xff]  ;;  %v668_v45 = vld [vmem:[#allocation8 + $0x68] sm:$0xff] }
  0x45   : > { %372 = vmatpush.msra.mxu0 %v343_v14  ;;  %v686_v43 = vld [vmem:[#allocation8 + $0xf8] sm:$0xff]  ;;  %691 = vmatpush.msra.mxu2 %v670_v41  ;;  %v685_v44 = vld [vmem:[#allocation8 + $0xf0] sm:$0xff]  ;;  %v304_v46 = vld [vmem:[%s1529_s11 + $0x48] sm:$0xff] }
  0x46   : > { %485 = vmatpush.msra.mxu1 %v344_v15  ;;  %804 = vmatpush.msra.mxu3 %v686_v43  ;;  %v667_v47 = vld [vmem:[#allocation8 + $0x60] sm:$0xff]  ;;  %v684_v48 = vld [vmem:[#allocation8 + $0xe8] sm:$0xff]  ;;  %v666_v49 = vld [vmem:[#allocation8 + $0x58] sm:$0xff] }
  0x47   : > { %373 = vmatpush.msra.mxu0 %v341_v16  ;;  %692 = vmatpush.msra.mxu2 %v669_v42  ;;  %v683_v50 = vld [vmem:[#allocation8 + $0xe0] sm:$0xff]  ;;  %v665_v51 = vld [vmem:[#allocation8 + $0x50] sm:$0xff]  ;;  %v682_v52 = vld [vmem:[#allocation8 + $0xd8] sm:$0xff] }
  0x48   : > { %486 = vmatpush.msra.mxu1 %v342_v17  ;;  %805 = vmatpush.msra.mxu3 %v685_v44  ;;  %v664_v53 = vld [vmem:[#allocation8 + $0x48] sm:$0xff]  ;;  %v681_v54 = vld [vmem:[#allocation8 + $0xd0] sm:$0xff]  ;;  %v663_v56 = vld [vmem:[#allocation8 + $0x40] sm:$0xff] }
  0x49   : > { %374 = vmatpush.msra.mxu0 %v339_v18  ;;  %693 = vmatpush.msra.mxu2 %v668_v45  ;;  %v305_v55 = vld [vmem:[%s1529_s11 + $0x50] sm:$0xff]  ;;  %v662_v58 = vld [vmem:[#allocation8 + $0x38] sm:$0xff]  ;;  %v679_v59 = vld [vmem:[#allocation8 + $0xc0] sm:$0xff] }
  0x4a   : > { %487 = vmatpush.msra.mxu1 %v340_v19  ;;  %806 = vmatpush.msra.mxu3 %v684_v48  ;;  %v680_v57 = vld [vmem:[#allocation8 + $0xc8] sm:$0xff]  ;;  %v661_v60 = vld [vmem:[#allocation8 + $0x30] sm:$0xff]  ;;  %v678_v61 = vld [vmem:[#allocation8 + $0xb8] sm:$0xff] }
  0x4b   : > { %375 = vmatpush.msra.mxu0 %v337_v20  ;;  %694 = vmatpush.msra.mxu2 %v667_v47  ;;  %v660_v62 = vld [vmem:[#allocation8 + $0x28] sm:$0xff]  ;;  %v677_v63 = vld [vmem:[#allocation8 + $0xb0] sm:$0xff]  ;;  %v659_v1 = vld [vmem:[#allocation8 + $0x20] sm:$0xff] }
  0x4c   : > { %488 = vmatpush.msra.mxu1 %v338_v21  ;;  %807 = vmatpush.msra.mxu3 %v683_v50  ;;  %v306_v0 = vld [vmem:[%s1529_s11 + $0x58] sm:$0xff]  ;;  %v676_v2 = vld [vmem:[#allocation8 + $0xa8] sm:$0xff]  ;;  %v675_v4 = vld [vmem:[#allocation8 + $0xa0] sm:$0xff] }
  0x4d   : > { %376 = vmatpush.msra.mxu0 %v335_v22  ;;  %695 = vmatpush.msra.mxu2 %v666_v49  ;;  %v658_v3 = vld [vmem:[#allocation8 + $0x18] sm:$0xff]  ;;  %v657_v5 = vld [vmem:[#allocation8 + $0x10] sm:$0xff]  ;;  %v656_v8 = vld [vmem:[#allocation8 + $0x8] sm:$0xff] }
  0x4e   : > { %489 = vmatpush.msra.mxu1 %v336_v23  ;;  %808 = vmatpush.msra.mxu3 %v682_v52  ;;  %v674_v6 = vld [vmem:[#allocation8 + $0x98] sm:$0xff]  ;;  %v673_v9 = vld [vmem:[#allocation8 + $0x90] sm:$0xff]  ;;  %v655_v10 = vld [vmem:[#allocation8] sm:$0xff] }
  0x4f   : > { %377 = vmatpush.msra.mxu0 %v333_v24  ;;  %696 = vmatpush.msra.mxu2 %v665_v51  ;;  %v307_v7 = vld [vmem:[%s1529_s11 + $0x60] sm:$0xff]  ;;  %v672_v11 = vld [vmem:[#allocation8 + $0x88] sm:$0xff]  ;;  %v310_v15 = vld [vmem:[%s1529_s11 + $0x78] sm:$0xff] }
  0x50   : > { %490 = vmatpush.msra.mxu1 %v334_v25  ;;  %809 = vmatpush.msra.mxu3 %v681_v54  ;;  %v671_v12 = vld [vmem:[#allocation8 + $0x80] sm:$0xff]  ;;  %v309_v14 = vld [vmem:[%s1529_s11 + $0x70] sm:$0xff]  ;;  %v359_v16 = vld [vmem:[#allocation7] sm:$0x3] }
  0x51   : > { %378 = vmatpush.msra.mxu0 %v331_v26  ;;  %697 = vmatpush.msra.mxu2 %v664_v53  ;;  %v308_v13 = vld [vmem:[%s1529_s11 + $0x68] sm:$0xff]  ;;  %v1559_v17 = vperm.slane %v359_v16, 0  ;;  %v1561_v18 = vperm.slane %v359_v16, 1  ;;  %v311_v21 = vld [vmem:[%s1529_s11 + $0x80] sm:$0xff]  ;;  %v314_v42 = vld [vmem:[%s1529_s11 + $0x98] sm:$0xff] }
  0x52   : > { %491 = vmatpush.msra.mxu1 %v332_v27  ;;  %810 = vmatpush.msra.mxu3 %v680_v57  ;;  %v315_v49 = vld [vmem:[%s1529_s11 + $0xa0] sm:$0xff] }
  0x53   : > { %379 = vmatpush.msra.mxu0 %v329_v28  ;;  %698 = vmatpush.msra.mxu2 %v663_v56  ;;  %v312_v28 = vld [vmem:[%s1529_s11 + $0x88] sm:$0xff] }
  0x54   : > { %492 = vmatpush.msra.mxu1 %v330_v29  ;;  %811 = vmatpush.msra.mxu3 %v679_v59  ;;  %v316_v56 = vld [vmem:[%s1529_s11 + $0xa8] sm:$0xff] }
  0x55   : > { %380 = vmatpush.msra.mxu0 %v327_v30  ;;  %699 = vmatpush.msra.mxu2 %v662_v58 }
  0x56   : > { %493 = vmatpush.msra.mxu1 %v328_v31  ;;  %381 = vmatmul.f32.vlgmr.msra.gmra.mxu0 %v295_v32 }
  0x57   : > { %494 = vmatmul.f32.vlgmr.msra.gmra.mxu1 %v295_v32  ;;  %700 = vmatpush.msra.mxu2 %v661_v60 }
  0x58   : > { %812 = vmatpush.msra.mxu3 %v678_v61 }
  0x59   : > { %701 = vmatpush.msra.mxu2 %v660_v62 }
  0x5a   : > { %813 = vmatpush.msra.mxu3 %v677_v63  ;;  %v317_v63 = vld [vmem:[%s1529_s11 + $0xb0] sm:$0xff] }
  0x5b   : > { %702 = vmatpush.msra.mxu2 %v659_v1 }
  0x5c   : > { %814 = vmatpush.msra.mxu3 %v676_v2 }
  0x5d   : > { %703 = vmatpush.msra.mxu2 %v658_v3 }
  0x5e   : > { %384 = vmatmul.f32.gmra.mxu0 %v296_v33  ;;  %815 = vmatpush.msra.mxu3 %v675_v4 }
  0x5f   : > { %497 = vmatmul.f32.gmra.mxu1 %v296_v33  ;;  %704 = vmatpush.msra.mxu2 %v657_v5 }
  0x60   : > { %816 = vmatpush.msra.mxu3 %v674_v6  ;;  %v318_v6 = vld [vmem:[%s1529_s11 + $0xb8] sm:$0xff] }
  0x61   : > { %705 = vmatpush.msra.mxu2 %v656_v8 }
  0x62   : > { %817 = vmatpush.msra.mxu3 %v673_v9 }
  0x63   : > { %706 = vmatpush.msra.mxu2 %v655_v10 }
  0x64   : > { %818 = vmatpush.msra.mxu3 %v672_v11 }
  0x66   : > { %387 = vmatmul.f32.gmra.mxu0 %v297_v34  ;;  %819 = vmatpush.msra.mxu3 %v671_v12 }
  0x67   : > { %500 = vmatmul.f32.gmra.mxu1 %v297_v34 }
  0x6e   : > { %390 = vmatmul.f32.gmra.mxu0 %v298_v35 }
  0x6f   : > { %503 = vmatmul.f32.gmra.mxu1 %v298_v35  ;;  %v313_v35 = vld [vmem:[%s1529_s11 + $0x90] sm:$0xff] }
  0x76   : > { %393 = vmatmul.f32.gmra.mxu0 %v299_v36 }
  0x77   : > { %506 = vmatmul.f32.gmra.mxu1 %v299_v36 }
  0x7e   : > { %396 = vmatmul.f32.gmra.mxu0 %v300_v37 }
  0x7f   : > { %509 = vmatmul.f32.gmra.mxu1 %v300_v37 }
  0x86   : > { %399 = vmatmul.f32.gmra.mxu0 %v301_v38 }
  0x87   : > { %512 = vmatmul.f32.gmra.mxu1 %v301_v38 }
  0x8e   : > { %402 = vmatmul.f32.gmra.mxu0 %v302_v39 }
  0x8f   : > { %515 = vmatmul.f32.gmra.mxu1 %v302_v39 }
  0x96   : > { %405 = vmatmul.f32.gmra.mxu0 %v303_v40 }
  0x97   : > { %518 = vmatmul.f32.gmra.mxu1 %v303_v40 }
  0x9e   : > { %408 = vmatmul.f32.gmra.mxu0 %v304_v46 }
  0x9f   : > { %521 = vmatmul.f32.gmra.mxu1 %v304_v46 }
  0xa6   : > { %411 = vmatmul.f32.gmra.mxu0 %v305_v55 }
  0xa7   : > { %524 = vmatmul.f32.gmra.mxu1 %v305_v55 }
  0xae   : > { %414 = vmatmul.f32.gmra.mxu0 %v306_v0 }
  0xaf   : > { %527 = vmatmul.f32.gmra.mxu1 %v306_v0 }
  0xb6   : > { %417 = vmatmul.f32.gmra.mxu0 %v307_v7 }
  0xb7   : > { %530 = vmatmul.f32.gmra.mxu1 %v307_v7 }
  0xbe   : > { %420 = vmatmul.f32.gmra.mxu0 %v308_v13 }
  0xbf   : > { %533 = vmatmul.f32.gmra.mxu1 %v308_v13  ;;  %v319_v13 = vld [vmem:[%s1529_s11 + $0xc0] sm:$0xff] }
  0xc6   : > { %423 = vmatmul.f32.gmra.mxu0 %v309_v14 }
  0xc7   : > { %536 = vmatmul.f32.gmra.mxu1 %v309_v14 }
  0xce   : > { %426 = vmatmul.f32.gmra.mxu0 %v310_v15 }
  0xcf   : > { %539 = vmatmul.f32.gmra.mxu1 %v310_v15 }
  0xd3   : > { %v382_v19 = vpop.f32.mrf.mxu0 }
  0xd4   : > { %v495_v20 = vpop.f32.mrf.mxu1  ;;  %v383_v22 = vadd.f32 %v382_v19, %v1559_v17 }
  0xd5   : > { %v496_v23 = vadd.f32 %v495_v20, %v1561_v18 }
  0xd6   : > { %429 = vmatmul.f32.gmra.mxu0 %v311_v21  ;;  %v591_v24 = vmax.f32 %v383_v22, 0.0  ;;  %v320_v22 = vld [vmem:[%s1529_s11 + $0xc8] sm:$0xff] }
  0xd7   : > { %542 = vmatmul.f32.gmra.mxu1 %v311_v21  ;;  %v592_v25 = vmax.f32 %v496_v23, 0.0 }
  0xd8   : > { %707 = vmatmul.f32.vlgmr.msra.gmra.mxu2 %v591_v24 }
  0xd9   : > { %820 = vmatmul.f32.vlgmr.msra.gmra.mxu3 %v592_v25 }
  0xdb   : > { %v385_v26 = vpop.f32.mrf.mxu0 }
  0xdc   : > { %v498_v27 = vpop.f32.mrf.mxu1  ;;  %v386_v29 = vadd.f32 %v385_v26, %v1559_v17 }
  0xdd   : > { %v499_v30 = vadd.f32 %v498_v27, %v1561_v18 }
  0xde   : > { %432 = vmatmul.f32.gmra.mxu0 %v312_v28  ;;  %v593_v31 = vmax.f32 %v386_v29, 0.0  ;;  %v321_v29 = vld [vmem:[%s1529_s11 + $0xd0] sm:$0xff] }
  0xdf   : > { %545 = vmatmul.f32.gmra.mxu1 %v312_v28  ;;  %v594_v32 = vmax.f32 %v499_v30, 0.0 }
  0xe0   : > { %710 = vmatmul.f32.gmra.mxu2 %v593_v31 }
  0xe1   : > { %823 = vmatmul.f32.gmra.mxu3 %v594_v32 }
  0xe3   : > { %v388_v33 = vpop.f32.mrf.mxu0 }
  0xe4   : > { %v501_v34 = vpop.f32.mrf.mxu1  ;;  %v389_v36 = vadd.f32 %v388_v33, %v1559_v17 }
  0xe5   : > { %v502_v37 = vadd.f32 %v501_v34, %v1561_v18 }
  0xe6   : > { %435 = vmatmul.f32.gmra.mxu0 %v313_v35  ;;  %v595_v38 = vmax.f32 %v389_v36, 0.0  ;;  %v322_v36 = vld [vmem:[%s1529_s11 + $0xd8] sm:$0xff] }
  0xe7   : > { %548 = vmatmul.f32.gmra.mxu1 %v313_v35  ;;  %v596_v39 = vmax.f32 %v502_v37, 0.0 }
  0xe8   : > { %713 = vmatmul.f32.gmra.mxu2 %v595_v38 }
  0xe9   : > { %826 = vmatmul.f32.gmra.mxu3 %v596_v39 }
  0xeb   : > { %v391_v40 = vpop.f32.mrf.mxu0 }
  0xec   : > { %v504_v41 = vpop.f32.mrf.mxu1  ;;  %v392_v43 = vadd.f32 %v391_v40, %v1559_v17 }
  0xed   : > { %v505_v44 = vadd.f32 %v504_v41, %v1561_v18 }
  0xee   : > { %438 = vmatmul.f32.gmra.mxu0 %v314_v42  ;;  %v597_v45 = vmax.f32 %v392_v43, 0.0  ;;  %v323_v43 = vld [vmem:[%s1529_s11 + $0xe0] sm:$0xff] }
  0xef   : > { %551 = vmatmul.f32.gmra.mxu1 %v314_v42  ;;  %v598_v46 = vmax.f32 %v505_v44, 0.0 }
  0xf0   : > { %716 = vmatmul.f32.gmra.mxu2 %v597_v45 }
  0xf1   : > { %829 = vmatmul.f32.gmra.mxu3 %v598_v46 }
  0xf3   : > { %v394_v47 = vpop.f32.mrf.mxu0 }
  0xf4   : > { %v507_v48 = vpop.f32.mrf.mxu1  ;;  %v395_v50 = vadd.f32 %v394_v47, %v1559_v17 }
  0xf5   : > { %v508_v51 = vadd.f32 %v507_v48, %v1561_v18 }
  0xf6   : > { %441 = vmatmul.f32.gmra.mxu0 %v315_v49  ;;  %v599_v52 = vmax.f32 %v395_v50, 0.0  ;;  %v324_v50 = vld [vmem:[%s1529_s11 + $0xe8] sm:$0xff] }
  0xf7   : > { %554 = vmatmul.f32.gmra.mxu1 %v315_v49  ;;  %v600_v53 = vmax.f32 %v508_v51, 0.0 }
  0xf8   : > { %719 = vmatmul.f32.gmra.mxu2 %v599_v52 }
  0xf9   : > { %832 = vmatmul.f32.gmra.mxu3 %v600_v53 }
  0xfb   : > { %v397_v54 = vpop.f32.mrf.mxu0 }
  0xfc   : > { %v510_v55 = vpop.f32.mrf.mxu1  ;;  %v398_v57 = vadd.f32 %v397_v54, %v1559_v17 }
  0xfd   : > { %v511_v58 = vadd.f32 %v510_v55, %v1561_v18 }
  0xfe   : > { %444 = vmatmul.f32.gmra.mxu0 %v316_v56  ;;  %v601_v59 = vmax.f32 %v398_v57, 0.0  ;;  %v325_v57 = vld [vmem:[%s1529_s11 + $0xf0] sm:$0xff] }
  0xff   : > { %557 = vmatmul.f32.gmra.mxu1 %v316_v56  ;;  %v602_v60 = vmax.f32 %v511_v58, 0.0 }
 0x100   : > { %722 = vmatmul.f32.gmra.mxu2 %v601_v59 }
 0x101   : > { %835 = vmatmul.f32.gmra.mxu3 %v602_v60 }
 0x103   : > { %v400_v61 = vpop.f32.mrf.mxu0 }
 0x104   : > { %v513_v62 = vpop.f32.mrf.mxu1  ;;  %v401_v0 = vadd.f32 %v400_v61, %v1559_v17 }
 0x105   : > { %v514_v1 = vadd.f32 %v513_v62, %v1561_v18 }
 0x106   : > { %447 = vmatmul.f32.gmra.mxu0 %v317_v63  ;;  %v603_v2 = vmax.f32 %v401_v0, 0.0  ;;  %v326_v0 = vld [vmem:[%s1529_s11 + $0xf8] sm:$0xff] }
 0x107   : > { %560 = vmatmul.f32.gmra.mxu1 %v317_v63  ;;  %v604_v3 = vmax.f32 %v514_v1, 0.0 }
 0x108   : > { %725 = vmatmul.f32.gmra.mxu2 %v603_v2 }
 0x109   : > { %838 = vmatmul.f32.gmra.mxu3 %v604_v3 }
 0x10b   : > { %v403_v4 = vpop.f32.mrf.mxu0 }
 0x10c   : > { %v516_v5 = vpop.f32.mrf.mxu1  ;;  %v404_v7 = vadd.f32 %v403_v4, %v1559_v17 }
 0x10d   : > { %v517_v8 = vadd.f32 %v516_v5, %v1561_v18 }
 0x10e   : > { %450 = vmatmul.f32.gmra.mxu0 %v318_v6  ;;  %v605_v9 = vmax.f32 %v404_v7, 0.0 }
 0x10f   : > { %563 = vmatmul.f32.gmra.mxu1 %v318_v6  ;;  %v606_v10 = vmax.f32 %v517_v8, 0.0 }
 0x110   : > { %728 = vmatmul.f32.gmra.mxu2 %v605_v9 }
 0x111   : > { %841 = vmatmul.f32.gmra.mxu3 %v606_v10 }
 0x113   : > { %v406_v11 = vpop.f32.mrf.mxu0 }
 0x114   : > { %v519_v12 = vpop.f32.mrf.mxu1  ;;  %v407_v14 = vadd.f32 %v406_v11, %v1559_v17  ;;  %v1616_v11 = vld [vmem:[%s1754_s4] ss:$0 sm:$0xff] }
 0x115   : > { %v520_v15 = vadd.f32 %v519_v12, %v1561_v18 }
 0x116   : > { %v607_v16 = vmax.f32 %v407_v14, 0.0  ;;  %453 = vmatmul.f32.gmra.mxu0 %v319_v13 }
 0x117   : > { %v608_v19 = vmax.f32 %v520_v15, 0.0  ;;  %566 = vmatmul.f32.gmra.mxu1 %v319_v13 }
 0x118   : > { %731 = vmatmul.f32.gmra.mxu2 %v607_v16 }
 0x119   : > { %844 = vmatmul.f32.gmra.mxu3 %v608_v19 }
 0x11b   : > { %v409_v20 = vpop.f32.mrf.mxu0 }
 0x11c   : > { %v522_v21 = vpop.f32.mrf.mxu1  ;;  %v410_v23 = vadd.f32 %v409_v20, %v1559_v17 }
 0x11d   : > { %v523_v24 = vadd.f32 %v522_v21, %v1561_v18 }
 0x11e   : > { %v609_v25 = vmax.f32 %v410_v23, 0.0  ;;  %456 = vmatmul.f32.gmra.mxu0 %v320_v22 }
 0x11f   : > { %v610_v26 = vmax.f32 %v523_v24, 0.0  ;;  %569 = vmatmul.f32.gmra.mxu1 %v320_v22 }
 0x120   : > { %734 = vmatmul.f32.gmra.mxu2 %v609_v25 }
 0x121   : > { %847 = vmatmul.f32.gmra.mxu3 %v610_v26 }
 0x123   : > { %v412_v27 = vpop.f32.mrf.mxu0 }
 0x124   : > { %v525_v28 = vpop.f32.mrf.mxu1  ;;  %v413_v30 = vadd.f32 %v412_v27, %v1559_v17 }
 0x125   : > { %v526_v31 = vadd.f32 %v525_v28, %v1561_v18 }
 0x126   : > { %v611_v32 = vmax.f32 %v413_v30, 0.0  ;;  %459 = vmatmul.f32.gmra.mxu0 %v321_v29 }
 0x127   : > { %v612_v33 = vmax.f32 %v526_v31, 0.0  ;;  %572 = vmatmul.f32.gmra.mxu1 %v321_v29 }
 0x128   : > { %737 = vmatmul.f32.gmra.mxu2 %v611_v32 }
 0x129   : > { %850 = vmatmul.f32.gmra.mxu3 %v612_v33 }
 0x12b   : > { %v415_v34 = vpop.f32.mrf.mxu0 }
 0x12c   : > { %v528_v35 = vpop.f32.mrf.mxu1  ;;  %v416_v37 = vadd.f32 %v415_v34, %v1559_v17 }
 0x12d   : > { %v529_v38 = vadd.f32 %v528_v35, %v1561_v18 }
 0x12e   : > { %v613_v39 = vmax.f32 %v416_v37, 0.0  ;;  %462 = vmatmul.f32.gmra.mxu0 %v322_v36 }
 0x12f   : > { %v614_v40 = vmax.f32 %v529_v38, 0.0  ;;  %575 = vmatmul.f32.gmra.mxu1 %v322_v36 }
 0x130   : > { %740 = vmatmul.f32.gmra.mxu2 %v613_v39 }
 0x131   : > { %853 = vmatmul.f32.gmra.mxu3 %v614_v40 }
 0x133   : > { %v418_v41 = vpop.f32.mrf.mxu0 }
 0x134   : > { %v531_v42 = vpop.f32.mrf.mxu1  ;;  %v419_v44 = vadd.f32 %v418_v41, %v1559_v17 }
 0x135   : > { %v532_v45 = vadd.f32 %v531_v42, %v1561_v18 }
 0x136   : > { %v615_v46 = vmax.f32 %v419_v44, 0.0  ;;  %465 = vmatmul.f32.gmra.mxu0 %v323_v43 }
 0x137   : > { %v616_v47 = vmax.f32 %v532_v45, 0.0  ;;  %578 = vmatmul.f32.gmra.mxu1 %v323_v43 }
 0x138   : > { %743 = vmatmul.f32.gmra.mxu2 %v615_v46 }
 0x139   : > { %856 = vmatmul.f32.gmra.mxu3 %v616_v47 }
 0x13b   : > { %v421_v48 = vpop.f32.mrf.mxu0 }
 0x13c   : > { %v534_v49 = vpop.f32.mrf.mxu1  ;;  %v422_v51 = vadd.f32 %v421_v48, %v1559_v17 }
 0x13d   : > { %v535_v52 = vadd.f32 %v534_v49, %v1561_v18 }
 0x13e   : > { %v617_v53 = vmax.f32 %v422_v51, 0.0  ;;  %468 = vmatmul.f32.gmra.mxu0 %v324_v50 }
 0x13f   : > { %v618_v54 = vmax.f32 %v535_v52, 0.0  ;;  %581 = vmatmul.f32.gmra.mxu1 %v324_v50 }
 0x140   : > { %746 = vmatmul.f32.gmra.mxu2 %v617_v53 }
 0x141   : > { %859 = vmatmul.f32.gmra.mxu3 %v618_v54 }
 0x143   : > { %v424_v55 = vpop.f32.mrf.mxu0 }
 0x144   : > { %v537_v56 = vpop.f32.mrf.mxu1  ;;  %v425_v58 = vadd.f32 %v424_v55, %v1559_v17 }
 0x145   : > { %v538_v59 = vadd.f32 %v537_v56, %v1561_v18 }
 0x146   : > { %v619_v60 = vmax.f32 %v425_v58, 0.0  ;;  %471 = vmatmul.f32.gmra.mxu0 %v325_v57 }
 0x147   : > { %v620_v61 = vmax.f32 %v538_v59, 0.0  ;;  %584 = vmatmul.f32.gmra.mxu1 %v325_v57 }
 0x148   : > { %749 = vmatmul.f32.gmra.mxu2 %v619_v60 }
 0x149   : > { %862 = vmatmul.f32.gmra.mxu3 %v620_v61 }
 0x14b   : > { %v427_v62 = vpop.f32.mrf.mxu0 }
 0x14c   : > { %v540_v63 = vpop.f32.mrf.mxu1  ;;  %v428_v1 = vadd.f32 %v427_v62, %v1559_v17 }
 0x14d   : > { %v541_v2 = vadd.f32 %v540_v63, %v1561_v18 }
 0x14e   : > { %v621_v3 = vmax.f32 %v428_v1, 0.0  ;;  %474 = vmatmul.f32.gmra.mxu0 %v326_v0 }
 0x14f   : > { %v622_v4 = vmax.f32 %v541_v2, 0.0  ;;  %587 = vmatmul.f32.gmra.mxu1 %v326_v0 }
 0x150   : > { %752 = vmatmul.f32.gmra.mxu2 %v621_v3 }
 0x151   : > { %865 = vmatmul.f32.gmra.mxu3 %v622_v4 }
 0x153   : > { %v430_v5 = vpop.f32.mrf.mxu0 }
 0x154   : > { %v543_v6 = vpop.f32.mrf.mxu1  ;;  %v431_v7 = vadd.f32 %v430_v5, %v1559_v17 }
 0x155   : > { %v544_v8 = vadd.f32 %v543_v6, %v1561_v18 }
 0x156   : > { %v623_v9 = vmax.f32 %v431_v7, 0.0 }
 0x157   : > { %v624_v10 = vmax.f32 %v544_v8, 0.0 }
 0x158   : > { %755 = vmatmul.f32.gmra.mxu2 %v623_v9 }
 0x159   : > { %868 = vmatmul.f32.gmra.mxu3 %v624_v10 }
 0x15b   : > { %v433_v12 = vpop.f32.mrf.mxu0  ;;  %v708_v13 = vpop.f32.mrf.mxu2 }
 0x15c   : > { %v434_v14 = vadd.f32 %v433_v12, %v1559_v17  ;;  %v709_v15 = vadd.f32 %v1616_v11, %v708_v13  ;;  %v546_v16 = vpop.f32.mrf.mxu1  ;;  %v821_v19 = vpop.f32.mrf.mxu3 }
 0x15d   : > { %v547_v20 = vadd.f32 %v546_v16, %v1561_v18 }
 0x15e   : > { %v625_v21 = vmax.f32 %v434_v14, 0.0  ;;  %v822_v22 = vadd.f32 %v821_v19, %v709_v15 }
 0x15f   : > { %v626_v23 = vmax.f32 %v547_v20, 0.0 }
 0x160   : > { %917 = vst [vmem:[%s1623_s28] sm:$0xff] %v822_v22  ;;  %758 = vmatmul.f32.gmra.mxu2 %v625_v21 }
 0x161   : > { %871 = vmatmul.f32.gmra.mxu3 %v626_v23 }
 0x163   : > { %v436_v24 = vpop.f32.mrf.mxu0  ;;  %v711_v25 = vpop.f32.mrf.mxu2 }
 0x164   : > { %v437_v26 = vadd.f32 %v436_v24, %v1559_v17  ;;  %v712_v27 = vadd.f32 %v1616_v11, %v711_v25  ;;  %v549_v28 = vpop.f32.mrf.mxu1  ;;  %v824_v29 = vpop.f32.mrf.mxu3 }
 0x165   : > { %v550_v30 = vadd.f32 %v549_v28, %v1561_v18 }
 0x166   : > { %v627_v31 = vmax.f32 %v437_v26, 0.0  ;;  %v825_v32 = vadd.f32 %v824_v29, %v712_v27 }
 0x167   : > { %v628_v33 = vmax.f32 %v550_v30, 0.0 }
 0x168   : > { %918 = vst [vmem:[%s1623_s28 + $0x8] sm:$0xff] %v825_v32  ;;  %761 = vmatmul.f32.gmra.mxu2 %v627_v31 }
 0x169   : > { %874 = vmatmul.f32.gmra.mxu3 %v628_v33 }
 0x16b   : > { %v439_v34 = vpop.f32.mrf.mxu0  ;;  %v714_v35 = vpop.f32.mrf.mxu2 }
 0x16c   : > { %v440_v36 = vadd.f32 %v439_v34, %v1559_v17  ;;  %v715_v37 = vadd.f32 %v1616_v11, %v714_v35  ;;  %v552_v38 = vpop.f32.mrf.mxu1  ;;  %v827_v39 = vpop.f32.mrf.mxu3 }
 0x16d   : > { %v553_v40 = vadd.f32 %v552_v38, %v1561_v18 }
 0x16e   : > { %v629_v41 = vmax.f32 %v440_v36, 0.0  ;;  %v828_v42 = vadd.f32 %v827_v39, %v715_v37 }
 0x16f   : > { %v630_v43 = vmax.f32 %v553_v40, 0.0 }
 0x170   : > { %919 = vst [vmem:[%s1623_s28 + $0x10] sm:$0xff] %v828_v42  ;;  %764 = vmatmul.f32.gmra.mxu2 %v629_v41 }
 0x171   : > { %877 = vmatmul.f32.gmra.mxu3 %v630_v43 }
 0x173   : > { %v442_v44 = vpop.f32.mrf.mxu0  ;;  %v717_v45 = vpop.f32.mrf.mxu2 }
 0x174   : > { %v443_v46 = vadd.f32 %v442_v44, %v1559_v17  ;;  %v718_v47 = vadd.f32 %v1616_v11, %v717_v45  ;;  %v555_v48 = vpop.f32.mrf.mxu1  ;;  %v830_v49 = vpop.f32.mrf.mxu3 }
 0x175   : > { %v556_v50 = vadd.f32 %v555_v48, %v1561_v18 }
 0x176   : > { %v631_v51 = vmax.f32 %v443_v46, 0.0  ;;  %v831_v52 = vadd.f32 %v830_v49, %v718_v47 }
 0x177   : > { %v632_v53 = vmax.f32 %v556_v50, 0.0 }
 0x178   : > { %920 = vst [vmem:[%s1623_s28 + $0x18] sm:$0xff] %v831_v52  ;;  %767 = vmatmul.f32.gmra.mxu2 %v631_v51 }
 0x179   : > { %880 = vmatmul.f32.gmra.mxu3 %v632_v53 }
 0x17b   : > { %v445_v54 = vpop.f32.mrf.mxu0  ;;  %v720_v55 = vpop.f32.mrf.mxu2 }
 0x17c   : > { %v446_v56 = vadd.f32 %v445_v54, %v1559_v17  ;;  %v721_v57 = vadd.f32 %v1616_v11, %v720_v55  ;;  %v558_v58 = vpop.f32.mrf.mxu1  ;;  %v833_v59 = vpop.f32.mrf.mxu3 }
 0x17d   : > { %v559_v60 = vadd.f32 %v558_v58, %v1561_v18 }
 0x17e   : > { %v633_v61 = vmax.f32 %v446_v56, 0.0  ;;  %v834_v62 = vadd.f32 %v833_v59, %v721_v57 }
 0x17f   : > { %v634_v63 = vmax.f32 %v559_v60, 0.0 }
 0x180   : > { %921 = vst [vmem:[%s1623_s28 + $0x20] sm:$0xff] %v834_v62  ;;  %770 = vmatmul.f32.gmra.mxu2 %v633_v61 }
 0x181   : > { %883 = vmatmul.f32.gmra.mxu3 %v634_v63 }
 0x183   : > { %v448_v0 = vpop.f32.mrf.mxu0  ;;  %v723_v1 = vpop.f32.mrf.mxu2 }
 0x184   : > { %v449_v2 = vadd.f32 %v448_v0, %v1559_v17  ;;  %v724_v3 = vadd.f32 %v1616_v11, %v723_v1  ;;  %v561_v4 = vpop.f32.mrf.mxu1  ;;  %v836_v5 = vpop.f32.mrf.mxu3 }
 0x185   : > { %v562_v6 = vadd.f32 %v561_v4, %v1561_v18 }
 0x186   : > { %v635_v7 = vmax.f32 %v449_v2, 0.0  ;;  %v837_v8 = vadd.f32 %v836_v5, %v724_v3 }
 0x187   : > { %v636_v9 = vmax.f32 %v562_v6, 0.0 }
 0x188   : > { %922 = vst [vmem:[%s1623_s28 + $0x28] sm:$0xff] %v837_v8  ;;  %773 = vmatmul.f32.gmra.mxu2 %v635_v7 }
 0x189   : > { %886 = vmatmul.f32.gmra.mxu3 %v636_v9 }
 0x18b   : > { %v451_v10 = vpop.f32.mrf.mxu0  ;;  %v726_v12 = vpop.f32.mrf.mxu2 }
 0x18c   : > { %v452_v13 = vadd.f32 %v451_v10, %v1559_v17  ;;  %v727_v14 = vadd.f32 %v1616_v11, %v726_v12  ;;  %v564_v15 = vpop.f32.mrf.mxu1  ;;  %v839_v16 = vpop.f32.mrf.mxu3 }
 0x18d   : > { %v565_v19 = vadd.f32 %v564_v15, %v1561_v18 }
 0x18e   : > { %v637_v20 = vmax.f32 %v452_v13, 0.0  ;;  %v840_v21 = vadd.f32 %v839_v16, %v727_v14 }
 0x18f   : > { %v638_v22 = vmax.f32 %v565_v19, 0.0 }
 0x190   : > { %923 = vst [vmem:[%s1623_s28 + $0x30] sm:$0xff] %v840_v21  ;;  %776 = vmatmul.f32.gmra.mxu2 %v637_v20 }
 0x191   : > { %889 = vmatmul.f32.gmra.mxu3 %v638_v22 }
 0x193   : > { %v454_v23 = vpop.f32.mrf.mxu0  ;;  %v729_v24 = vpop.f32.mrf.mxu2 }
 0x194   : > { %v455_v25 = vadd.f32 %v454_v23, %v1559_v17  ;;  %v730_v26 = vadd.f32 %v1616_v11, %v729_v24  ;;  %v567_v27 = vpop.f32.mrf.mxu1  ;;  %v842_v28 = vpop.f32.mrf.mxu3 }
 0x195   : > { %v568_v29 = vadd.f32 %v567_v27, %v1561_v18 }
 0x196   : > { %v639_v30 = vmax.f32 %v455_v25, 0.0  ;;  %v843_v31 = vadd.f32 %v842_v28, %v730_v26 }
 0x197   : > { %v640_v32 = vmax.f32 %v568_v29, 0.0 }
 0x198   : > { %924 = vst [vmem:[%s1623_s28 + $0x38] sm:$0xff] %v843_v31  ;;  %779 = vmatmul.f32.gmra.mxu2 %v639_v30 }
 0x199   : > { %892 = vmatmul.f32.gmra.mxu3 %v640_v32 }
 0x19b   : > { %v457_v33 = vpop.f32.mrf.mxu0  ;;  %v732_v34 = vpop.f32.mrf.mxu2 }
 0x19c   : > { %v458_v35 = vadd.f32 %v457_v33, %v1559_v17  ;;  %v733_v36 = vadd.f32 %v1616_v11, %v732_v34  ;;  %v570_v37 = vpop.f32.mrf.mxu1  ;;  %v845_v38 = vpop.f32.mrf.mxu3 }
 0x19d   : > { %v571_v39 = vadd.f32 %v570_v37, %v1561_v18 }
 0x19e   : > { %v641_v40 = vmax.f32 %v458_v35, 0.0  ;;  %v846_v41 = vadd.f32 %v845_v38, %v733_v36 }
 0x19f   : > { %v642_v42 = vmax.f32 %v571_v39, 0.0 }
 0x1a0   : > { %925 = vst [vmem:[%s1623_s28 + $0x40] sm:$0xff] %v846_v41  ;;  %782 = vmatmul.f32.gmra.mxu2 %v641_v40 }
 0x1a1   : > { %895 = vmatmul.f32.gmra.mxu3 %v642_v42 }
 0x1a3   : > { %v460_v43 = vpop.f32.mrf.mxu0  ;;  %v735_v44 = vpop.f32.mrf.mxu2 }
 0x1a4   : > { %v461_v45 = vadd.f32 %v460_v43, %v1559_v17  ;;  %v736_v46 = vadd.f32 %v1616_v11, %v735_v44  ;;  %v573_v47 = vpop.f32.mrf.mxu1  ;;  %v848_v48 = vpop.f32.mrf.mxu3 }
 0x1a5   : > { %v574_v49 = vadd.f32 %v573_v47, %v1561_v18 }
 0x1a6   : > { %v643_v50 = vmax.f32 %v461_v45, 0.0  ;;  %v849_v51 = vadd.f32 %v848_v48, %v736_v46 }
 0x1a7   : > { %v644_v52 = vmax.f32 %v574_v49, 0.0 }
 0x1a8   : > { %926 = vst [vmem:[%s1623_s28 + $0x48] sm:$0xff] %v849_v51  ;;  %785 = vmatmul.f32.gmra.mxu2 %v643_v50 }
 0x1a9   : > { %898 = vmatmul.f32.gmra.mxu3 %v644_v52 }
 0x1ab   : > { %v463_v53 = vpop.f32.mrf.mxu0  ;;  %v738_v54 = vpop.f32.mrf.mxu2 }
 0x1ac   : > { %v464_v55 = vadd.f32 %v463_v53, %v1559_v17  ;;  %v739_v56 = vadd.f32 %v1616_v11, %v738_v54  ;;  %v576_v57 = vpop.f32.mrf.mxu1  ;;  %v851_v58 = vpop.f32.mrf.mxu3 }
 0x1ad   : > { %v577_v59 = vadd.f32 %v576_v57, %v1561_v18 }
 0x1ae   : > { %v645_v60 = vmax.f32 %v464_v55, 0.0  ;;  %v852_v61 = vadd.f32 %v851_v58, %v739_v56 }
 0x1af   : > { %v646_v62 = vmax.f32 %v577_v59, 0.0 }
 0x1b0   : > { %927 = vst [vmem:[%s1623_s28 + $0x50] sm:$0xff] %v852_v61  ;;  %788 = vmatmul.f32.gmra.mxu2 %v645_v60 }
 0x1b1   : > { %901 = vmatmul.f32.gmra.mxu3 %v646_v62 }
 0x1b3   : > { %v466_v63 = vpop.f32.mrf.mxu0  ;;  %v741_v0 = vpop.f32.mrf.mxu2 }
 0x1b4   : > { %v467_v1 = vadd.f32 %v466_v63, %v1559_v17  ;;  %v742_v2 = vadd.f32 %v1616_v11, %v741_v0  ;;  %v579_v3 = vpop.f32.mrf.mxu1  ;;  %v854_v4 = vpop.f32.mrf.mxu3 }
 0x1b5   : > { %v580_v5 = vadd.f32 %v579_v3, %v1561_v18 }
 0x1b6   : > { %v647_v6 = vmax.f32 %v467_v1, 0.0  ;;  %v855_v7 = vadd.f32 %v854_v4, %v742_v2 }
 0x1b7   : > { %v648_v8 = vmax.f32 %v580_v5, 0.0 }
 0x1b8   : > { %928 = vst [vmem:[%s1623_s28 + $0x58] sm:$0xff] %v855_v7  ;;  %791 = vmatmul.f32.gmra.mxu2 %v647_v6 }
 0x1b9   : > { %904 = vmatmul.f32.gmra.mxu3 %v648_v8 }
 0x1bb   : > { %v469_v9 = vpop.f32.mrf.mxu0  ;;  %v744_v10 = vpop.f32.mrf.mxu2 }
 0x1bc   : > { %v470_v12 = vadd.f32 %v469_v9, %v1559_v17  ;;  %v745_v13 = vadd.f32 %v1616_v11, %v744_v10  ;;  %v582_v14 = vpop.f32.mrf.mxu1  ;;  %v857_v15 = vpop.f32.mrf.mxu3 }
 0x1bd   : > { %v583_v16 = vadd.f32 %v582_v14, %v1561_v18 }
 0x1be   : > { %v649_v19 = vmax.f32 %v470_v12, 0.0  ;;  %v858_v20 = vadd.f32 %v857_v15, %v745_v13 }
 0x1bf   : > { %v650_v21 = vmax.f32 %v583_v16, 0.0 }
 0x1c0   : > { %929 = vst [vmem:[%s1623_s28 + $0x60] sm:$0xff] %v858_v20  ;;  %794 = vmatmul.f32.gmra.mxu2 %v649_v19 }
 0x1c1   : > { %907 = vmatmul.f32.gmra.mxu3 %v650_v21 }
 0x1c3   : > { %v472_v22 = vpop.f32.mrf.mxu0  ;;  %v747_v23 = vpop.f32.mrf.mxu2 }
 0x1c4   : > { %v473_v24 = vadd.f32 %v472_v22, %v1559_v17  ;;  %v748_v25 = vadd.f32 %v1616_v11, %v747_v23  ;;  %v585_v26 = vpop.f32.mrf.mxu1  ;;  %v860_v27 = vpop.f32.mrf.mxu3 }
 0x1c5   : > { %v586_v28 = vadd.f32 %v585_v26, %v1561_v18 }
 0x1c6   : > { %v651_v29 = vmax.f32 %v473_v24, 0.0  ;;  %v861_v30 = vadd.f32 %v860_v27, %v748_v25 }
 0x1c7   : > { %v652_v31 = vmax.f32 %v586_v28, 0.0 }
 0x1c8   : > { %930 = vst [vmem:[%s1623_s28 + $0x68] sm:$0xff] %v861_v30  ;;  %797 = vmatmul.f32.gmra.mxu2 %v651_v29 }
 0x1c9   : > { %910 = vmatmul.f32.gmra.mxu3 %v652_v31 }
 0x1cb   : > { %v475_v32 = vpop.f32.mrf.mxu0  ;;  %v750_v33 = vpop.f32.mrf.mxu2 }
 0x1cc   : > { %v476_v34 = vadd.f32 %v475_v32, %v1559_v17  ;;  %v751_v35 = vadd.f32 %v1616_v11, %v750_v33  ;;  %v588_v36 = vpop.f32.mrf.mxu1  ;;  %v863_v37 = vpop.f32.mrf.mxu3 }
 0x1cd   : > { %v589_v38 = vadd.f32 %v588_v36, %v1561_v18 }
 0x1ce   : > { %v653_v39 = vmax.f32 %v476_v34, 0.0  ;;  %v864_v40 = vadd.f32 %v863_v37, %v751_v35 }
 0x1cf   : > { %v654_v41 = vmax.f32 %v589_v38, 0.0 }
 0x1d0   : > { %931 = vst [vmem:[%s1623_s28 + $0x70] sm:$0xff] %v864_v40  ;;  %800 = vmatmul.f32.gmra.mxu2 %v653_v39 }
 0x1d1   : > { %913 = vmatmul.f32.gmra.mxu3 %v654_v41 }
 0x1d3   : > { %v753_v42 = vpop.f32.mrf.mxu2 }
 0x1d4   : > { %v754_v43 = vadd.f32 %v1616_v11, %v753_v42  ;;  %v866_v44 = vpop.f32.mrf.mxu3 }
 0x1d6   : > { %v867_v45 = vadd.f32 %v866_v44, %v754_v43 }
 0x1d8   : > { %932 = vst [vmem:[%s1623_s28 + $0x78] sm:$0xff] %v867_v45 }
 0x1db   : > { %v756_v17 = vpop.f32.mrf.mxu2 }
 0x1dc   : > { %v757_v46 = vadd.f32 %v1616_v11, %v756_v17  ;;  %v869_v47 = vpop.f32.mrf.mxu3 }
 0x1de   : > { %v870_v18 = vadd.f32 %v869_v47, %v757_v46 }
 0x1e0   : > { %933 = vst [vmem:[%s1623_s28 + $0x80] sm:$0xff] %v870_v18 }
 0x1e3   : > { %v759_v48 = vpop.f32.mrf.mxu2 }
 0x1e4   : > { %v760_v49 = vadd.f32 %v1616_v11, %v759_v48  ;;  %v872_v50 = vpop.f32.mrf.mxu3 }
 0x1e6   : > { %v873_v51 = vadd.f32 %v872_v50, %v760_v49 }
 0x1e8   : > { %934 = vst [vmem:[%s1623_s28 + $0x88] sm:$0xff] %v873_v51 }
 0x1eb   : > { %v762_v52 = vpop.f32.mrf.mxu2 }
 0x1ec   : > { %v763_v53 = vadd.f32 %v1616_v11, %v762_v52  ;;  %v875_v54 = vpop.f32.mrf.mxu3 }
 0x1ee   : > { %v876_v55 = vadd.f32 %v875_v54, %v763_v53 }
 0x1f0   : > { %935 = vst [vmem:[%s1623_s28 + $0x90] sm:$0xff] %v876_v55 }
 0x1f3   : > { %v765_v56 = vpop.f32.mrf.mxu2 }
 0x1f4   : > { %v766_v57 = vadd.f32 %v1616_v11, %v765_v56  ;;  %v878_v58 = vpop.f32.mrf.mxu3 }
 0x1f6   : > { %v879_v59 = vadd.f32 %v878_v58, %v766_v57 }
 0x1f8   : > { %936 = vst [vmem:[%s1623_s28 + $0x98] sm:$0xff] %v879_v59 }
 0x1fb   : > { %v768_v60 = vpop.f32.mrf.mxu2 }
 0x1fc   : > { %v769_v61 = vadd.f32 %v1616_v11, %v768_v60  ;;  %v881_v62 = vpop.f32.mrf.mxu3 }
 0x1fe   : > { %v882_v63 = vadd.f32 %v881_v62, %v769_v61 }
 0x200   : > { %937 = vst [vmem:[%s1623_s28 + $0xa0] sm:$0xff] %v882_v63 }
 0x203   : > { %v771_v0 = vpop.f32.mrf.mxu2 }
 0x204   : > { %v772_v1 = vadd.f32 %v1616_v11, %v771_v0  ;;  %v884_v2 = vpop.f32.mrf.mxu3 }
 0x206   : > { %v885_v3 = vadd.f32 %v884_v2, %v772_v1 }
 0x208   : > { %938 = vst [vmem:[%s1623_s28 + $0xa8] sm:$0xff] %v885_v3 }
 0x20b   : > { %v774_v4 = vpop.f32.mrf.mxu2 }
 0x20c   : > { %v775_v5 = vadd.f32 %v1616_v11, %v774_v4  ;;  %v887_v6 = vpop.f32.mrf.mxu3 }
 0x20e   : > { %v888_v7 = vadd.f32 %v887_v6, %v775_v5 }
 0x210   : > { %939 = vst [vmem:[%s1623_s28 + $0xb0] sm:$0xff] %v888_v7 }
 0x213   : > { %v777_v8 = vpop.f32.mrf.mxu2 }
 0x214   : > { %v778_v9 = vadd.f32 %v1616_v11, %v777_v8  ;;  %v890_v10 = vpop.f32.mrf.mxu3 }
 0x216   : > { %v891_v12 = vadd.f32 %v890_v10, %v778_v9 }
 0x218   : > { %940 = vst [vmem:[%s1623_s28 + $0xb8] sm:$0xff] %v891_v12 }
 0x21b   : > { %v780_v13 = vpop.f32.mrf.mxu2 }
 0x21c   : > { %v781_v14 = vadd.f32 %v1616_v11, %v780_v13  ;;  %v893_v15 = vpop.f32.mrf.mxu3 }
 0x21e   : > { %v894_v16 = vadd.f32 %v893_v15, %v781_v14 }
 0x220   : > { %941 = vst [vmem:[%s1623_s28 + $0xc0] sm:$0xff] %v894_v16 }
 0x223   : > { %v783_v19 = vpop.f32.mrf.mxu2 }
 0x224   : > { %v784_v20 = vadd.f32 %v1616_v11, %v783_v19  ;;  %v896_v21 = vpop.f32.mrf.mxu3 }
 0x226   : > { %v897_v22 = vadd.f32 %v896_v21, %v784_v20 }
 0x228   : > { %942 = vst [vmem:[%s1623_s28 + $0xc8] sm:$0xff] %v897_v22 }
 0x22b   : > { %v786_v23 = vpop.f32.mrf.mxu2 }
 0x22c   : > { %v787_v24 = vadd.f32 %v1616_v11, %v786_v23  ;;  %v899_v25 = vpop.f32.mrf.mxu3 }
 0x22e   : > { %v900_v26 = vadd.f32 %v899_v25, %v787_v24 }
 0x230   : > { %943 = vst [vmem:[%s1623_s28 + $0xd0] sm:$0xff] %v900_v26 }
 0x233   : > { %v789_v27 = vpop.f32.mrf.mxu2 }
 0x234   : > { %v790_v28 = vadd.f32 %v1616_v11, %v789_v27  ;;  %v902_v29 = vpop.f32.mrf.mxu3 }
 0x236   : > { %v903_v30 = vadd.f32 %v902_v29, %v790_v28 }
 0x238   : > { %944 = vst [vmem:[%s1623_s28 + $0xd8] sm:$0xff] %v903_v30 }
 0x23b   : > { %v792_v31 = vpop.f32.mrf.mxu2 }
 0x23c   : > { %v793_v32 = vadd.f32 %v1616_v11, %v792_v31  ;;  %v905_v33 = vpop.f32.mrf.mxu3 }
 0x23e   : > { %v906_v34 = vadd.f32 %v905_v33, %v793_v32 }
 0x240   : > { %945 = vst [vmem:[%s1623_s28 + $0xe0] sm:$0xff] %v906_v34 }
 0x243   : > { %v795_v35 = vpop.f32.mrf.mxu2 }
 0x244   : > { %v796_v36 = vadd.f32 %v1616_v11, %v795_v35  ;;  %v908_v37 = vpop.f32.mrf.mxu3 }
 0x246   : > { %v909_v38 = vadd.f32 %v908_v37, %v796_v36 }
 0x248   : > { %946 = vst [vmem:[%s1623_s28 + $0xe8] sm:$0xff] %v909_v38 }
 0x24b   : > { %v798_v39 = vpop.f32.mrf.mxu2 }
 0x24c   : > { %v799_v40 = vadd.f32 %v1616_v11, %v798_v39  ;;  %v911_v41 = vpop.f32.mrf.mxu3 }
 0x24e   : > { %v912_v42 = vadd.f32 %v911_v41, %v799_v40 }
 0x250   : > { %947 = vst [vmem:[%s1623_s28 + $0xf0] sm:$0xff] %v912_v42 }
 0x253   : > { %v801_v43 = vpop.f32.mrf.mxu2 }
 0x254   : > { %v802_v44 = vadd.f32 %v1616_v11, %v801_v43  ;;  %v914_v45 = vpop.f32.mrf.mxu3 }
 0x256   : > { %v915_v17 = vadd.f32 %v914_v45, %v802_v44 }
 0x258   : > { %948 = vst [vmem:[%s1623_s28 + $0xf8] sm:$0xff] %v915_v17 }
 0x259   : > { %1320 = shalt.err (!%p1317_p10)
}
 0x25a   : > { %s1376_s17 = smov 128   ;;  %s1377_s29 = smov 8  }
 0x25b   : > { %1103 = dma.vmem_to_hbm [thread:$0]  (%p1493_p3), %s963_s13, 4096, %s965_s12, %s950_s14, %s1376_s17, %s1376_s17, %s1377_s29  }
 0x25c PF: > { %s979_s28 = sand.u32 1, %s1355_s18   ;;  %p1764_p12 = scmp.ge.s32.totalorder %s1367_s21, 2 }
 0x25d   : > { %s980_s16 = scalar_lea.sflag [#allocation4], %s979_s28 }
 0x25e   : > { %p1120_p13 = pnand %p1764_p12, %p1443_p6 }
 0x260   : > { %p1121_p0 = pneg %p1120_p13 }
 0x262   : > { %1350 = dma.done.wait (%p1121_p0), %s980_s16, 4096  }
 0x263   : > { %1352 = vsyncadd (%p1121_p0), %s980_s16, 4294963200  ;;  %p20_p5 = scmp.ge.s32.totalorder %s1480_s30, 4   ;;  %s1765_s18 = smov %s1359_s19 }
 0x264   : > { %s1766_s19 = smov %s1363_s20  ;;  %s1767_s20 = smov %s1489_s9 }
 0x265   : > { %s1768_s21 = smov %s1480_s30  ;;  %22 = sbr.rel (!%p20_p5) target bundleno = 7 (0x7), region = 97 }
 0x26a   :  { %986 = vsyncpa [#allocation3], 1 }
 0x26b   :  { %988 = vsyncpa [#allocation3 + $0x1], 1 }
 0x26c   :  { %989 = vsyncpa [#allocation6], 1 }
 0x26d   :  { %990 = vsyncpa [#allocation9], 1 }
 0x26e   :  { %991 = vsyncpa [#allocation4], 1 }
 0x26f   :  { %993 = vsyncpa [#allocation4 + $0x1], 1 }

</bundles_post_ra>
